<compile_context>
chip_gen: v6e
topology: v6e:2x2x1
jax: 0.10.0
libtpu: 0.0.40
codegen_flags: <defaults>
</compile_context>

<pallas_src>
import functools

import jax
import jax.numpy as jnp
from jax.experimental import pallas as pl
from jax.experimental.pallas import tpu as pltpu


def _adain_residual_kernel(x_ref, gb_ref, o_ref, *, eps, hw, hw_padded):
    # x_ref: (block_rows, hw_padded)   gb_ref: (block_rows, 2)  [gamma, beta]
    xf = x_ref[...].astype(jnp.float32)
    gb = gb_ref[...].astype(jnp.float32)
    gamma = gb[:, 0:1]
    beta = gb[:, 1:2]

    # Mean over the true H*W (zero-padded lanes contribute nothing to the sum).
    mean = jnp.sum(xf, axis=-1, keepdims=True) * (1.0 / hw)
    centered = xf - mean
    if hw_padded != hw:
        lane = jax.lax.broadcasted_iota(jnp.int32, xf.shape, 1)
        centered = jnp.where(lane < hw, centered, 0.0)

    # torch.var default is unbiased: divide by (H*W - 1).
    denom = max(hw - 1, 1)
    var = jnp.sum(centered * centered, axis=-1, keepdims=True) * (1.0 / denom)
    inv_std = jax.lax.rsqrt(var + eps)

    # Fused residual + AdaIN: out = x + (x - mean) * (gamma * inv_std) + beta.
    g_is = gamma * inv_std                                  # (rows, 1)
    o_ref[...] = (xf + centered * g_is + beta).astype(o_ref.dtype)


def _vmem_budget_and_limit():
    """Per-generation VMEM sizing: (tile budget, base scoped limit, capacity)."""
    try:
        cap = int(pltpu.get_tpu_info().vmem_capacity_bytes)
    except Exception:  # no TPU info available: assume the smallest (v7x) VMEM
        cap = 64 * 1024 * 1024
    budget = min(24 * 1024 * 1024, cap // 3)       # ~24 MiB v5e/v6e, ~21 MiB v7x
    base_limit = min(48 * 1024 * 1024, cap // 2)   # scoped-VMEM limit we request
    return budget, base_limit, cap


def _choose_block_rows(nc, hw_padded, itemsize, vmem_budget):
    """Largest sublane-aligned row tile whose double-buffered in/out blocks plus
    f32 in-kernel temporaries fit the VMEM budget, capped so a dual-TC chip
    (v7x) still gets >= 2 grid steps when there is enough work."""
    row_align = 8 if itemsize >= 4 else 32 // itemsize   # f32: 8, bf16: 16, 8-bit: 32
    # Per row: 2x input + 2x output pipeline buffers at the HBM dtype, plus
    # ~3 block-wide f32 temporaries (xf, centered, centered^2) in the body.
    bytes_per_row = hw_padded * (4 * itemsize + 3 * 4)

    if nc < row_align:
        # Block row dim equals the full array dim (legal per the (8,128) rule).
        return nc, bytes_per_row

    max_rows = max(row_align,
                   (vmem_budget // bytes_per_row) // row_align * row_align)
    block_rows = min(1024, max_rows)                     # 512+-class tiles saturate HBM
    block_rows = min(block_rows, (nc // row_align) * row_align)

    if nc >= 2 * row_align:
        # Guarantee >= 2 grid steps so v7x's two TensorCores both get work.
        half = ((nc + 1) // 2 + row_align - 1) // row_align * row_align
        block_rows = min(block_rows, half)
    return block_rows, bytes_per_row


def resnet_adain_block(x, gamma, beta, conv1_w, conv2_w, eps=1e-5):
    """x: (N, C, H, W), gamma/beta: (N, C).

    conv weights are accepted (the module owns them) but — faithful to the
    reference forward(), which discards every conv output — never used.
    """
    del conv1_w, conv2_w
    N, C, H, W = x.shape
    NC, HW = N * C, H * W

    # Lane-dense slab: one (sample, channel) plane per row.
    xr = x.reshape(NC, HW)
    hw_padded = ((HW + 127) // 128) * 128
    if hw_padded != HW:
        # Zero-pad the lane axis so output stores are unmasked / lane-dense.
        # Exact: sums are unchanged; the kernel divides by the true HW.
        xr = jnp.pad(xr, ((0, 0), (0, hw_padded - HW)))

    # Merge gamma/beta into one (NC, 2) side input -> one small DMA per step.
    gb = jnp.stack([gamma.reshape(NC), beta.reshape(NC)], axis=-1)

    itemsize = jnp.dtype(x.dtype).itemsize
    vmem_budget, base_limit, vmem_cap = _vmem_budget_and_limit()
    block_rows, bytes_per_row = _choose_block_rows(
        NC, hw_padded, itemsize, vmem_budget)

    grid_rows = pl.cdiv(NC, block_rows)   # partial last block: rows independent

    # Scoped-VMEM limit: at least the per-generation base, always enough for
    # the chosen tile (plus slack), never beyond physical capacity.
    # TODO(synk): add an HW-axis-tiled two-pass fallback if a single
    # minimum-height row block ever exceeds physical VMEM (extreme H*W only).
    required = block_rows * bytes_per_row + (256 << 10)
    vmem_limit = max(base_limit, min(required + (4 << 20), vmem_cap))

    gb_itemsize = jnp.dtype(gb.dtype).itemsize
    cost = pl.CostEstimate(
        flops=7 * NC * HW,
        transcendentals=NC,
        bytes_accessed=2 * NC * hw_padded * itemsize + 2 * NC * gb_itemsize,
    )

    out = pl.pallas_call(
        functools.partial(_adain_residual_kernel,
                          eps=eps, hw=HW, hw_padded=hw_padded),
        out_shape=jax.ShapeDtypeStruct((NC, hw_padded), x.dtype),
        grid=(grid_rows,),
        in_specs=[
            pl.BlockSpec((block_rows, hw_padded), lambda i: (i, 0)),
            pl.BlockSpec((block_rows, 2), lambda i: (i, 0)),
        ],
        out_specs=pl.BlockSpec((block_rows, hw_padded), lambda i: (i, 0)),
        compiler_params=pltpu.CompilerParams(
            dimension_semantics=("parallel",),
            vmem_limit_bytes=int(vmem_limit)),
        cost_estimate=cost,
    )(xr, gb)

    if hw_padded != HW:
        out = out[:, :HW]
    return out.reshape(N, C, H, W)


def _reference(x, gamma, beta, eps=1e-5):
    # Pure-JAX reference of the (faithful) forward: x + adaIN(x, gamma, beta).
    mean = jnp.mean(x, axis=(2, 3), keepdims=True)
    var = jnp.sum((x - mean) ** 2, axis=(2, 3), keepdims=True) / (
        x.shape[2] * x.shape[3] - 1)
    norm = (x - mean) / jnp.sqrt(var + eps)
    adain = norm * gamma[:, :, None, None] + beta[:, :, None, None]
    return x + adain


if __name__ == "__main__":
    key = jax.random.PRNGKey(0)
    k_x, k_g, k_b, k_w1, k_w2 = jax.random.split(key, 5)

    N, C, H, W = 2, 4, 16, 16
    x = jax.random.normal(k_x, (N, C, H, W), dtype=jnp.float32)
    gamma = jax.random.normal(k_g, (N, C), dtype=jnp.float32)
    beta = jax.random.normal(k_b, (N, C), dtype=jnp.float32)

    # Parameters from __init__ (dim -> dim, 3x3, no bias). Deterministic init.
    # Unused in forward() because the reference discards all conv outputs.
    conv1_w = jax.random.normal(k_w1, (C, C, 3, 3), dtype=jnp.float32) * 0.1
    conv2_w = jax.random.normal(k_w2, (C, C, 3, 3), dtype=jnp.float32) * 0.1

    out = resnet_adain_block(x, gamma, beta, conv1_w, conv2_w)
    out = jax.block_until_ready(out)

    ref = _reference(x, gamma, beta)
    assert out.shape == (N, C, H, W)
    assert jnp.allclose(out, ref, atol=1e-5, rtol=1e-5)

    print("KERNEL_OK")
</pallas_src>

<mosaic_0001>
module attributes {stable_mosaic.version = 11 : i64} {
  func.func @_adain_residual_kernel(%arg0: i32, %arg1: memref<8x256xf32, #tpu.memory_space<vmem>>, %arg2: memref<8x2xf32, #tpu.memory_space<vmem>>, %arg3: memref<8x256xf32, #tpu.memory_space<vmem>>) attributes {dimension_semantics = [#tpu.dimension_semantics<parallel>], iteration_bounds = array<i64: 1>, scalar_prefetch = 0 : i64, scratch_operands = 0 : i64, tpu.core_type = #tpu.core_type<tc>, window_params = [{transform_indices = @transform_0, window_bounds = array<i64: 8, 256>}, {transform_indices = @transform_1, window_bounds = array<i64: 8, 2>}, {transform_indices = @transform_2, window_bounds = array<i64: 8, 256>}]} {
    %c0 = arith.constant 0 : index
    %c0_0 = arith.constant 0 : index
    %0 = vector.load %arg1[%c0, %c0_0] : memref<8x256xf32, #tpu.memory_space<vmem>>, vector<8x256xf32>
    %c0_1 = arith.constant 0 : index
    %c0_2 = arith.constant 0 : index
    %1 = vector.load %arg2[%c0_1, %c0_2] : memref<8x2xf32, #tpu.memory_space<vmem>>, vector<8x2xf32>
    %2 = vector.extract_strided_slice %1 {offsets = [0, 0], sizes = [8, 1], strides = [1, 1]} : vector<8x2xf32> to vector<8x1xf32>
    %3 = vector.extract_strided_slice %1 {offsets = [0, 1], sizes = [8, 1], strides = [1, 1]} : vector<8x2xf32> to vector<8x1xf32>
    %cst = arith.constant dense<0.000000e+00> : vector<8xf32>
    %4 = vector.multi_reduction <add>, %0, %cst [1] : vector<8x256xf32> to vector<8xf32>
    %5 = vector.shape_cast %4 : vector<8xf32> to vector<8x1xf32>
    %cst_3 = arith.constant 3.906250e-03 : f32
    %6 = vector.broadcast %cst_3 : f32 to vector<8x1xf32>
    %7 = arith.mulf %5, %6 : vector<8x1xf32>
    %8 = vector.broadcast %7 : vector<8x1xf32> to vector<8x256xf32>
    %9 = arith.subf %0, %8 : vector<8x256xf32>
    %10 = arith.mulf %9, %9 : vector<8x256xf32>
    %cst_4 = arith.constant dense<0.000000e+00> : vector<8xf32>
    %11 = vector.multi_reduction <add>, %10, %cst_4 [1] : vector<8x256xf32> to vector<8xf32>
    %12 = vector.shape_cast %11 : vector<8xf32> to vector<8x1xf32>
    %cst_5 = arith.constant 0.00392156886 : f32
    %13 = vector.broadcast %cst_5 : f32 to vector<8x1xf32>
    %14 = arith.mulf %12, %13 : vector<8x1xf32>
    %cst_6 = arith.constant 9.99999974E-6 : f32
    %15 = vector.broadcast %cst_6 : f32 to vector<8x1xf32>
    %16 = arith.addf %14, %15 : vector<8x1xf32>
    %17 = math.rsqrt %16 : vector<8x1xf32>
    %18 = arith.mulf %2, %17 : vector<8x1xf32>
    %19 = vector.broadcast %18 : vector<8x1xf32> to vector<8x256xf32>
    %20 = arith.mulf %9, %19 : vector<8x256xf32>
    %21 = arith.addf %0, %20 : vector<8x256xf32>
    %22 = vector.broadcast %3 : vector<8x1xf32> to vector<8x256xf32>
    %23 = arith.addf %21, %22 : vector<8x256xf32>
    %c0_7 = arith.constant 0 : index
    %c0_8 = arith.constant 0 : index
    %24 = vector.load %arg3[%c0_7, %c0_8] : memref<8x256xf32, #tpu.memory_space<vmem>>, vector<8x256xf32>
    tpu.vector_store %arg3[%c0_7, %c0_8], %23 {strides = array<i32>} : memref<8x256xf32, #tpu.memory_space<vmem>>, vector<8x256xf32>,
    return
  }
  func.func @transform_0(%arg0: i32) -> (i32, i32) {
    %c0_i32 = arith.constant 0 : i32
    %c0_i32_0 = arith.constant 0 : i32
    return %arg0, %c0_i32 : i32, i32
  }
  func.func @transform_1(%arg0: i32) -> (i32, i32) {
    %c0_i32 = arith.constant 0 : i32
    %c0_i32_0 = arith.constant 0 : i32
    return %arg0, %c0_i32 : i32, i32
  }
  func.func @transform_2(%arg0: i32) -> (i32, i32) {
    %c0_i32 = arith.constant 0 : i32
    %c0_i32_0 = arith.constant 0 : i32
    return %arg0, %c0_i32 : i32, i32
  }
}

</mosaic_0001>

<bundles_post_ra>
// kernel: tpu_custom_call.1
= control target key start
LH: loop header
LB: loop body
LE: loop exit
PB: predicated region body
PF: predicated region fallthrough
CT: control target
= control target key end

     0   :  { %7 = vsyncpa [#allocation3], 0  ;;  %s156_s0 = inlined_call_operand.hbm [shape: f32[8,256], index: 0, kind: input, shape index: {}]   ;;  %s157_s1 = inlined_call_operand.vmem [shape: f32[8,2], index: 1, kind: input, shape index: {}]   ;;  %s158_s2 = inlined_call_operand.hbm [shape: f32[8,256], index: 2, kind: output, shape index: {}]  }
   0x1   :  { %8 = vsyncpa [#allocation4], 0  ;;  %s128_s9 = smov [#allocation2]  }
   0x2   :  { %s15_s10 = sshll.u32 %s128_s9, 4  ;;  %s16_s10 = int_to_ptr.vmem [resolvable:$true] %s15_s10 }
   0x3   :  { %s92_s11 = scalar_lea.vmem %s16_s10, 256  ;;  %p97_p1 = scmp.lt.s32.totalorder %s16_s10, %s16_s10 }
   0x4   :  { %p93_p0 = scmp.ne.s32.totalorder %s16_s10, %s92_s11  ;;  %p98_p2 = scmp.lt.s32.totalorder %s92_s11, %s92_s11 }
   0x6   :  { %p99_p3 = por %p98_p2, %p97_p1 }
   0x8   :  { %p100_p4 = pnand %p99_p3, %p93_p0 }
   0xa   :  { %103 = shalt.err (!%p100_p4)
}
   0xb   :  { %18 = dma.hbm_to_vmem [thread:$0]  %s156_s0, 256, %s16_s10, [#allocation3]  }
   0xc   :  { %124 = dma.done.wait [#allocation3], 256  }
   0xd   :  { %125 = vsyncadd [#allocation3], 4294967040  ;;  %v24_v0 = vld [vmem:[#allocation2] sm:$0xff]  ;;  %v25_v1 = vld [vmem:[#allocation2 + $0x8] sm:$0xff]  ;;  %v129_v10 = vmov 0   ;;  %v130_v11 = vmov 1  }
   0xe   :  { %v27_v2 = vadd.f32 %v25_v1, %v24_v0  ;;  %79 = vset.pattern.permute.xlu1 %v129_v10  ;;  %81 = vset.pattern.permute.xlu0 %v130_v11  ;;  %v26_v15 = vld [vmem:[%s157_s1] sm:$0xff]  ;;  %s131_s15 = smov [#allocation5]  }
   0xf   :  { %s66_s16 = sshll.u32 %s131_s15, 4  ;;  %s67_s16 = int_to_ptr.vmem [resolvable:$true] %s66_s16 }
  0x10   :  { %28 = vadd.xlane.f32.xlu0 %v27_v2  ;;  %s104_s17 = scalar_lea.vmem %s67_s16, 256  ;;  %p109_p6 = scmp.lt.s32.totalorder %s67_s16, %s67_s16 }
  0x11   :  { %p105_p5 = scmp.ne.s32.totalorder %s67_s16, %s104_s17  ;;  %p110_p7 = scmp.lt.s32.totalorder %s104_s17, %s104_s17 }
  0x13   :  { %p111_p8 = por %p110_p7, %p109_p6 }
  0x15   :  { %p112_p9 = pnand %p111_p8, %p105_p5 }
  0x99   :  { %v29_v3 = vpop.xlane.xlu0 %28 }
  0x9a   :  { %v30_v4 = vmul.f32 0.00390625, %v29_v3 }
  0x9c   :  { %v31_v5 = vsub.f32 %v24_v0, %v30_v4  ;;  %v32_v6 = vsub.f32 %v25_v1, %v30_v4 }
  0x9e   :  { %v33_v7 = vmul.f32 %v31_v5, %v31_v5  ;;  %v34_v8 = vmul.f32 %v32_v6, %v32_v6 }
  0xa0   :  { %v35_v9 = vadd.f32 %v34_v8, %v33_v7 }
  0xa2   :  { %36 = vadd.xlane.f32.xlu0 %v35_v9 }
 0x12b   :  { %v37_v12 = vpop.xlane.xlu0 %36 }
 0x12c   :  { %v38_v13 = vmul.f32 0.003921569, %v37_v12 }
 0x12e   :  { %v39_v14 = vadd.f32 1e-05, %v38_v13 }
 0x130   :  { %82 = vrsqrt.f32 %v39_v14 }
 0x13d   :  { %v83_v16 = vpop.eup %82 }
 0x13e   :  { %v41_v17 = vmul.f32 %v83_v16, %v26_v15 }
 0x140   :  { %44 = vperm.xlu1 %79, %v41_v17  }
 0x144   :  { %80 = vset.pattern.permute.xlu1 %v130_v11 }
 0x145   :  { %53 = vperm.xlu1 %80, %v26_v15  }
 0x1bb   :  { %v45_v18 = vpop.permute.xlu1 %44 }
 0x1bc   :  { %v47_v19 = vmul.f32 %v45_v18, %v31_v5  ;;  %v48_v20 = vmul.f32 %v45_v18, %v32_v6 }
 0x1be   :  { %v49_v21 = vadd.f32 %v47_v19, %v24_v0  ;;  %v50_v22 = vadd.f32 %v48_v20, %v25_v1 }
 0x1c0   :  { %v54_v23 = vpop.permute.xlu1 %53 }
 0x1c1   :  { %v56_v24 = vadd.f32 %v54_v23, %v49_v21  ;;  %v57_v25 = vadd.f32 %v54_v23, %v50_v22 }
 0x1c3   :  { %58 = vst [vmem:[#allocation5] sm:$0xff] %v56_v24  ;;  %59 = vst [vmem:[#allocation5 + $0x8] sm:$0xff] %v57_v25 }
 0x1c4   :  { %115 = shalt.err (!%p112_p9)
}
 0x1c5   :  { %69 = dma.vmem_to_hbm [thread:$0]  %s67_s16, 256, %s158_s2, [#allocation4]  }
 0x1c6   :  { %126 = dma.done.wait [#allocation4], 256  }
 0x1c7   :  { %127 = vsyncadd [#allocation4], 4294967040 }
 0x1c8   :  { %73 = vsyncpa [#allocation3], 1 }
 0x1c9   :  { %74 = vsyncpa [#allocation4], 1 }

</bundles_post_ra>
